<compile_context>
chip_gen: v7x
topology: tpu7x:2x2x1
jax: 0.10.0
libtpu: 0.0.40
codegen_flags: <defaults>
</compile_context>

<pallas_src>
import functools

import jax
import jax.numpy as jnp
from jax.experimental import pallas as pl
from jax.experimental.pallas import tpu as pltpu


def _round_up(x, m):
    return ((x + m - 1) // m) * m


def _multitask_loss_kernel(food_logits_ref, food_labels_ref,
                           cuisine_logits_ref, cuisine_labels_ref,
                           nutr_pred_ref, nutr_tgt_ref,
                           out_ref, *, tb, batch):
    """Per-batch-tile partial sums: [food CE sum, cuisine CE sum, nutrition SSE]."""
    # Mask for rows that belong to the real (un-padded) batch — this neutralises
    # the ragged last block (no wrapper-side padding of the big tensors).
    row0 = pl.program_id(0) * tb
    rows = row0 + jax.lax.broadcasted_iota(jnp.int32, (tb, 1), 0)
    valid = rows < batch                                          # (tb, 1) bool

    def ce_partial_sum(logits_ref, labels_ref):
        # Cast after load (inputs may be bf16); all math in f32.
        logits = logits_ref[...].astype(jnp.float32)              # (tb, C)
        b, c = logits.shape
        m = jnp.max(logits, axis=-1, keepdims=True)               # (tb, 1)
        shifted = logits - m
        # Single fused pass over `shifted`: exp-sum and picked logit together.
        sumexp = jnp.sum(jnp.exp(shifted), axis=-1, keepdims=True)
        labels = labels_ref[...]                                  # (tb, 1) int32
        classes = jax.lax.broadcasted_iota(jnp.int32, (b, c), 1)
        picked = jnp.sum(jnp.where(classes == labels, shifted, 0.0),
                         axis=-1, keepdims=True)                  # (tb, 1)
        per_row = jnp.log(sumexp) - picked                        # = lse - logits[label]
        return jnp.sum(jnp.where(valid, per_row, 0.0))

    food_sum = ce_partial_sum(food_logits_ref, food_labels_ref)
    cuis_sum = ce_partial_sum(cuisine_logits_ref, cuisine_labels_ref)

    diff = nutr_pred_ref[...].astype(jnp.float32) - nutr_tgt_ref[...].astype(jnp.float32)
    diff = jnp.where(valid, diff, 0.0)
    nutr_sum = jnp.sum(diff * diff)

    # Lane-dense (8, 128) output tile (unmasked vector store).  Partials sit on
    # lanes 0..2, replicated over sublanes; the wrapper reads sublane 0 only.
    lane = jax.lax.broadcasted_iota(jnp.int32, (8, 128), 1)
    tile = jnp.where(lane == 0, food_sum,
           jnp.where(lane == 1, cuis_sum,
           jnp.where(lane == 2, nutr_sum, 0.0)))
    out_ref[...] = tile[None, :, :]


def multitask_loss(predictions, targets,
                   food_weight=1.0, cuisine_weight=0.5, nutrition_weight=1.0,
                   block_b=None):
    """Pallas equivalent of MultiTaskLoss.forward."""
    food_logits, cuisine_logits, nutrition_values = predictions
    food_labels, cuisine_labels, nutrition_targets = targets

    batch = food_logits.shape[0]
    n_food = food_logits.shape[1]
    n_cuis = cuisine_logits.shape[1]
    n_nutr = nutrition_values.shape[1]

    # Labels as (B, 1) int32 (tiny; see header note on their VMEM footprint).
    food_labels2 = food_labels.reshape(-1, 1).astype(jnp.int32)
    cuisine_labels2 = cuisine_labels.reshape(-1, 1).astype(jnp.int32)

    # ---- generation-aware VMEM budget & batch-tile sizing -------------------
    try:
        vmem_cap = int(pltpu.get_tpu_info().vmem_capacity_bytes)
    except Exception:  # fall back to the most conservative generation (v7x)
        vmem_cap = 64 * 1024 * 1024
    # ~96 MiB on v5e/v6e (128 MiB physical), ~48 MiB on v7x (64 MiB physical).
    vmem_limit = min((vmem_cap * 3) // 4, 100 * 1024 * 1024)

    def _itemsize(x):
        return jnp.dtype(x.dtype).itemsize

    def _vmem_row_bytes(ncols, itemsize):
        # Lane-padded VMEM footprint per batch row of a (tb, ncols) block.
        return _round_up(ncols, 128) * itemsize

    vmem_row = (_vmem_row_bytes(n_food, _itemsize(food_logits))
                + _vmem_row_bytes(n_cuis, _itemsize(cuisine_logits))
                + _vmem_row_bytes(n_nutr, _itemsize(nutrition_values))
                + _vmem_row_bytes(n_nutr, _itemsize(nutrition_targets))
                + 2 * _vmem_row_bytes(1, 4))          # two (tb,1) i32 label blocks

    # bf16 packs 16 rows per sublane group -> round tb to 16 in that case.
    base = 16 if min(_itemsize(food_logits), _itemsize(cuisine_logits),
                     _itemsize(nutrition_values), _itemsize(nutrition_targets)) < 4 else 8

    if batch <= 128:
        # Single (possibly ragged) block; masked rows handle any overshoot.
        tb = _round_up(max(batch, 1), base)
    else:
        input_budget = max(vmem_limit - (8 << 20), 4 << 20)   # headroom for out + scratch
        tb = input_budget // (2 * vmem_row)                    # 2x double-buffered inputs
        tb = max(128, (tb // 128) * 128)
        cap = 1024 if block_b is None else max(128, (block_b // 128) * 128)
        tb = min(tb, cap)
        # Keep >= ~4 blocks so the "parallel" axis feeds both v7x TensorCores.
        tb = min(tb, max(128, _round_up(pl.cdiv(batch, 4), 128)))
    nblk = pl.cdiv(batch, tb)

    # ---- cost estimate (unpadded sizes) --------------------------------------
    in_bytes = sum(int(a.size) * _itemsize(a)
                   for a in (food_logits, cuisine_logits, nutrition_values,
                             nutrition_targets, food_labels2, cuisine_labels2))
    out_bytes = nblk * 8 * 128 * 4
    cost = pl.CostEstimate(
        flops=6 * batch * (n_food + n_cuis) + 3 * batch * n_nutr,
        transcendentals=batch * (n_food + n_cuis) + 2 * batch,
        bytes_accessed=in_bytes + out_bytes,
    )

    kernel = functools.partial(_multitask_loss_kernel, tb=tb, batch=batch)

    partials = pl.pallas_call(
        kernel,
        out_shape=jax.ShapeDtypeStruct((nblk, 8, 128), jnp.float32),
        grid_spec=pltpu.PrefetchScalarGridSpec(
            num_scalar_prefetch=0,
            grid=(nblk,),
            in_specs=[
                pl.BlockSpec((tb, n_food), lambda i: (i, 0)),
                pl.BlockSpec((tb, 1), lambda i: (i, 0)),
                pl.BlockSpec((tb, n_cuis), lambda i: (i, 0)),
                pl.BlockSpec((tb, 1), lambda i: (i, 0)),
                pl.BlockSpec((tb, n_nutr), lambda i: (i, 0)),
                pl.BlockSpec((tb, n_nutr), lambda i: (i, 0)),
            ],
            out_specs=pl.BlockSpec((1, 8, 128), lambda i: (i, 0, 0)),
        ),
        compiler_params=pltpu.CompilerParams(
            dimension_semantics=("parallel",),
            vmem_limit_bytes=int(vmem_limit)),
        cost_estimate=cost,
    )(food_logits, food_labels2, cuisine_logits, cuisine_labels2,
      nutrition_values, nutrition_targets)

    # Tiny final reduction + mean normalisation + weighting in plain JAX.
    sums = jnp.sum(partials[:, 0, :], axis=0)                     # (128,)
    food_loss = sums[0] / batch
    cuisine_loss = sums[1] / batch
    nutrition_loss = sums[2] / (batch * n_nutr)

    total_loss = (food_weight * food_loss
                  + cuisine_weight * cuisine_loss
                  + nutrition_weight * nutrition_loss)
    loss_dict = {
        'total_loss': total_loss,
        'food_loss': food_loss,
        'cuisine_loss': cuisine_loss,
        'nutrition_loss': nutrition_loss,
    }
    return total_loss, loss_dict


def _reference(predictions, targets, fw=1.0, cw=0.5, nw=1.0):
    """Plain-JAX reference (matches torch CrossEntropyLoss / MSELoss, mean reduction)."""
    food_logits, cuisine_logits, nutr_pred = predictions
    food_labels, cuisine_labels, nutr_tgt = targets

    def ce(logits, labels):
        logits = logits.astype(jnp.float32)
        lse = jax.scipy.special.logsumexp(logits, axis=-1)
        picked = jnp.take_along_axis(logits, labels[:, None], axis=-1)[:, 0]
        return jnp.mean(lse - picked)

    fl = ce(food_logits, food_labels)
    cl = ce(cuisine_logits, cuisine_labels)
    nl = jnp.mean((nutr_pred.astype(jnp.float32) - nutr_tgt.astype(jnp.float32)) ** 2)
    return fw * fl + cw * cl + nw * nl, (fl, cl, nl)


if __name__ == "__main__":
    B = 8
    N_FOOD = 16      # number of food classes
    N_CUISINE = 8    # number of cuisine classes
    N_NUTR = 4       # calories, protein, carbs, fat

    key = jax.random.PRNGKey(0)
    k1, k2, k3, k4, k5, k6 = jax.random.split(key, 6)

    food_logits = jax.random.normal(k1, (B, N_FOOD), jnp.float32)
    cuisine_logits = jax.random.normal(k2, (B, N_CUISINE), jnp.float32)
    nutrition_values = jax.random.normal(k3, (B, N_NUTR), jnp.float32)

    food_labels = jax.random.randint(k4, (B,), 0, N_FOOD, jnp.int32)
    cuisine_labels = jax.random.randint(k5, (B,), 0, N_CUISINE, jnp.int32)
    nutrition_targets = jax.random.normal(k6, (B, N_NUTR), jnp.float32)

    predictions = (food_logits, cuisine_logits, nutrition_values)
    targets = (food_labels, cuisine_labels, nutrition_targets)

    total_loss, loss_dict = multitask_loss(predictions, targets)
    total_loss = jax.block_until_ready(total_loss)

    ref_total, (ref_f, ref_c, ref_n) = _reference(predictions, targets)
    assert jnp.allclose(total_loss, ref_total, rtol=1e-5, atol=1e-5)
    assert jnp.allclose(loss_dict['food_loss'], ref_f, rtol=1e-5, atol=1e-5)
    assert jnp.allclose(loss_dict['cuisine_loss'], ref_c, rtol=1e-5, atol=1e-5)
    assert jnp.allclose(loss_dict['nutrition_loss'], ref_n, rtol=1e-5, atol=1e-5)

    print("KERNEL_OK")
</pallas_src>

<mosaic_0001>
module attributes {stable_mosaic.version = 11 : i64} {
  func.func @_multitask_loss_kernel(%arg0: i32, %arg1: memref<8x16xf32, #tpu.memory_space<vmem>>, %arg2: memref<8x1xi32, #tpu.memory_space<vmem>>, %arg3: memref<8x8xf32, #tpu.memory_space<vmem>>, %arg4: memref<8x1xi32, #tpu.memory_space<vmem>>, %arg5: memref<8x4xf32, #tpu.memory_space<vmem>>, %arg6: memref<8x4xf32, #tpu.memory_space<vmem>>, %arg7: memref<1x8x128xf32, #tpu.memory_space<vmem>>) attributes {dimension_semantics = [#tpu.dimension_semantics<parallel>], iteration_bounds = array<i64: 1>, scalar_prefetch = 0 : i64, scratch_operands = 0 : i64, tpu.core_type = #tpu.core_type<tc>, window_params = [{transform_indices = @transform_0, window_bounds = array<i64: 8, 16>}, {transform_indices = @transform_1, window_bounds = array<i64: 8, 1>}, {transform_indices = @transform_2, window_bounds = array<i64: 8, 8>}, {transform_indices = @transform_3, window_bounds = array<i64: 8, 1>}, {transform_indices = @transform_4, window_bounds = array<i64: 8, 4>}, {transform_indices = @transform_5, window_bounds = array<i64: 8, 4>}, {transform_indices = @transform_6, window_bounds = array<i64: 1, 8, 128>}]} {
    %c8_i32 = arith.constant 8 : i32
    %0 = arith.muli %arg0, %c8_i32 : i32
    %1 = tpu.iota {dimensions = array<i32: 0>} : vector<8x1xi32>
    %2 = vector.broadcast %0 : i32 to vector<8x1xi32>
    %3 = arith.addi %2, %1 : vector<8x1xi32>
    %c8_i32_0 = arith.constant 8 : i32
    %4 = vector.broadcast %c8_i32_0 : i32 to vector<8x1xi32>
    %5 = arith.cmpi slt, %3, %4 : vector<8x1xi32>
    %c0 = arith.constant 0 : index
    %c0_1 = arith.constant 0 : index
    %6 = vector.load %arg1[%c0, %c0_1] : memref<8x16xf32, #tpu.memory_space<vmem>>, vector<8x16xf32>
    %cst = arith.constant dense<0xFF800000> : vector<8xf32>
    %7 = vector.multi_reduction <maximumf>, %6, %cst [1] : vector<8x16xf32> to vector<8xf32>
    %8 = vector.shape_cast %7 : vector<8xf32> to vector<8x1xf32>
    %9 = vector.broadcast %8 : vector<8x1xf32> to vector<8x16xf32>
    %10 = arith.subf %6, %9 : vector<8x16xf32>
    %11 = math.exp %10 : vector<8x16xf32>
    %cst_2 = arith.constant dense<0.000000e+00> : vector<8xf32>
    %12 = vector.multi_reduction <add>, %11, %cst_2 [1] : vector<8x16xf32> to vector<8xf32>
    %13 = vector.shape_cast %12 : vector<8xf32> to vector<8x1xf32>
    %c0_3 = arith.constant 0 : index
    %c0_4 = arith.constant 0 : index
    %14 = vector.load %arg2[%c0_3, %c0_4] : memref<8x1xi32, #tpu.memory_space<vmem>>, vector<8x1xi32>
    %15 = tpu.iota {dimensions = array<i32: 1>} : vector<8x16xi32>
    %16 = vector.broadcast %14 : vector<8x1xi32> to vector<8x16xi32>
    %17 = arith.cmpi eq, %15, %16 : vector<8x16xi32>
    %cst_5 = arith.constant 0.000000e+00 : f32
    %18 = vector.broadcast %cst_5 : f32 to vector<8x16xf32>
    %19 = arith.select %17, %10, %18 : vector<8x16xi1>, vector<8x16xf32>
    %cst_6 = arith.constant dense<0.000000e+00> : vector<8xf32>
    %20 = vector.multi_reduction <add>, %19, %cst_6 [1] : vector<8x16xf32> to vector<8xf32>
    %21 = vector.shape_cast %20 : vector<8xf32> to vector<8x1xf32>
    %22 = math.log %13 : vector<8x1xf32>
    %23 = arith.subf %22, %21 : vector<8x1xf32>
    %cst_7 = arith.constant 0.000000e+00 : f32
    %24 = vector.broadcast %cst_7 : f32 to vector<8x1xf32>
    %25 = arith.select %5, %23, %24 : vector<8x1xi1>, vector<8x1xf32>
    %26 = vector.shape_cast %25 : vector<8x1xf32> to vector<1x8x1xf32>
    %cst_8 = arith.constant dense<0.000000e+00> : vector<1xf32>
    %27 = vector.multi_reduction <add>, %26, %cst_8 [1, 2] : vector<1x8x1xf32> to vector<1xf32>
    %28 = vector.shape_cast %27 : vector<1xf32> to vector<1x1x1xf32>
    %29 = vector.extract %28[0, 0, 0] : f32 from vector<1x1x1xf32>
    %c0_9 = arith.constant 0 : index
    %c0_10 = arith.constant 0 : index
    %30 = vector.load %arg3[%c0_9, %c0_10] : memref<8x8xf32, #tpu.memory_space<vmem>>, vector<8x8xf32>
    %cst_11 = arith.constant dense<0xFF800000> : vector<8xf32>
    %31 = vector.multi_reduction <maximumf>, %30, %cst_11 [1] : vector<8x8xf32> to vector<8xf32>
    %32 = vector.shape_cast %31 : vector<8xf32> to vector<8x1xf32>
    %33 = vector.broadcast %32 : vector<8x1xf32> to vector<8x8xf32>
    %34 = arith.subf %30, %33 : vector<8x8xf32>
    %35 = math.exp %34 : vector<8x8xf32>
    %cst_12 = arith.constant dense<0.000000e+00> : vector<8xf32>
    %36 = vector.multi_reduction <add>, %35, %cst_12 [1] : vector<8x8xf32> to vector<8xf32>
    %37 = vector.shape_cast %36 : vector<8xf32> to vector<8x1xf32>
    %c0_13 = arith.constant 0 : index
    %c0_14 = arith.constant 0 : index
    %38 = vector.load %arg4[%c0_13, %c0_14] : memref<8x1xi32, #tpu.memory_space<vmem>>, vector<8x1xi32>
    %39 = tpu.iota {dimensions = array<i32: 1>} : vector<8x8xi32>
    %40 = vector.broadcast %38 : vector<8x1xi32> to vector<8x8xi32>
    %41 = arith.cmpi eq, %39, %40 : vector<8x8xi32>
    %cst_15 = arith.constant 0.000000e+00 : f32
    %42 = vector.broadcast %cst_15 : f32 to vector<8x8xf32>
    %43 = arith.select %41, %34, %42 : vector<8x8xi1>, vector<8x8xf32>
    %cst_16 = arith.constant dense<0.000000e+00> : vector<8xf32>
    %44 = vector.multi_reduction <add>, %43, %cst_16 [1] : vector<8x8xf32> to vector<8xf32>
    %45 = vector.shape_cast %44 : vector<8xf32> to vector<8x1xf32>
    %46 = math.log %37 : vector<8x1xf32>
    %47 = arith.subf %46, %45 : vector<8x1xf32>
    %cst_17 = arith.constant 0.000000e+00 : f32
    %48 = vector.broadcast %cst_17 : f32 to vector<8x1xf32>
    %49 = arith.select %5, %47, %48 : vector<8x1xi1>, vector<8x1xf32>
    %50 = vector.shape_cast %49 : vector<8x1xf32> to vector<1x8x1xf32>
    %cst_18 = arith.constant dense<0.000000e+00> : vector<1xf32>
    %51 = vector.multi_reduction <add>, %50, %cst_18 [1, 2] : vector<1x8x1xf32> to vector<1xf32>
    %52 = vector.shape_cast %51 : vector<1xf32> to vector<1x1x1xf32>
    %53 = vector.extract %52[0, 0, 0] : f32 from vector<1x1x1xf32>
    %c0_19 = arith.constant 0 : index
    %c0_20 = arith.constant 0 : index
    %54 = vector.load %arg5[%c0_19, %c0_20] : memref<8x4xf32, #tpu.memory_space<vmem>>, vector<8x4xf32>
    %c0_21 = arith.constant 0 : index
    %c0_22 = arith.constant 0 : index
    %55 = vector.load %arg6[%c0_21, %c0_22] : memref<8x4xf32, #tpu.memory_space<vmem>>, vector<8x4xf32>
    %56 = arith.subf %54, %55 : vector<8x4xf32>
    %cst_23 = arith.constant 0.000000e+00 : f32
    %57 = vector.shape_cast %5 : vector<8x1xi1> to vector<8x1xi1>
    %58 = vector.broadcast %57 : vector<8x1xi1> to vector<8x4xi1>
    %59 = vector.broadcast %cst_23 : f32 to vector<8x4xf32>
    %60 = arith.select %58, %56, %59 : vector<8x4xi1>, vector<8x4xf32>
    %61 = arith.mulf %60, %60 : vector<8x4xf32>
    %62 = vector.shape_cast %61 : vector<8x4xf32> to vector<1x8x4xf32>
    %cst_24 = arith.constant dense<0.000000e+00> : vector<1xf32>
    %63 = vector.multi_reduction <add>, %62, %cst_24 [1, 2] : vector<1x8x4xf32> to vector<1xf32>
    %64 = vector.shape_cast %63 : vector<1xf32> to vector<1x1x1xf32>
    %65 = vector.extract %64[0, 0, 0] : f32 from vector<1x1x1xf32>
    %66 = tpu.iota {dimensions = array<i32: 1>} : vector<8x128xi32>
    %c0_i32 = arith.constant 0 : i32
    %67 = vector.broadcast %c0_i32 : i32 to vector<8x128xi32>
    %68 = arith.cmpi eq, %66, %67 : vector<8x128xi32>
    %c1_i32 = arith.constant 1 : i32
    %69 = vector.broadcast %c1_i32 : i32 to vector<8x128xi32>
    %70 = arith.cmpi eq, %66, %69 : vector<8x128xi32>
    %c2_i32 = arith.constant 2 : i32
    %71 = vector.broadcast %c2_i32 : i32 to vector<8x128xi32>
    %72 = arith.cmpi eq, %66, %71 : vector<8x128xi32>
    %cst_25 = arith.constant 0.000000e+00 : f32
    %73 = vector.broadcast %65 : f32 to vector<8x128xf32>
    %74 = vector.broadcast %cst_25 : f32 to vector<8x128xf32>
    %75 = arith.select %72, %73, %74 : vector<8x128xi1>, vector<8x128xf32>
    %76 = vector.broadcast %53 : f32 to vector<8x128xf32>
    %77 = arith.select %70, %76, %75 : vector<8x128xi1>, vector<8x128xf32>
    %78 = vector.broadcast %29 : f32 to vector<8x128xf32>
    %79 = arith.select %68, %78, %77 : vector<8x128xi1>, vector<8x128xf32>
    %80 = vector.shape_cast %79 : vector<8x128xf32> to vector<1x8x128xf32>
    %c0_26 = arith.constant 0 : index
    %c0_27 = arith.constant 0 : index
    %c0_28 = arith.constant 0 : index
    %81 = vector.load %arg7[%c0_26, %c0_27, %c0_28] : memref<1x8x128xf32, #tpu.memory_space<vmem>>, vector<1x8x128xf32>
    tpu.vector_store %arg7[%c0_26, %c0_27, %c0_28], %80 {strides = array<i32>} : memref<1x8x128xf32, #tpu.memory_space<vmem>>, vector<1x8x128xf32>,
    return
  }
  func.func @transform_0(%arg0: i32) -> (i32, i32) {
    %c0_i32 = arith.constant 0 : i32
    %c0_i32_0 = arith.constant 0 : i32
    return %arg0, %c0_i32 : i32, i32
  }
  func.func @transform_1(%arg0: i32) -> (i32, i32) {
    %c0_i32 = arith.constant 0 : i32
    %c0_i32_0 = arith.constant 0 : i32
    return %arg0, %c0_i32 : i32, i32
  }
  func.func @transform_2(%arg0: i32) -> (i32, i32) {
    %c0_i32 = arith.constant 0 : i32
    %c0_i32_0 = arith.constant 0 : i32
    return %arg0, %c0_i32 : i32, i32
  }
  func.func @transform_3(%arg0: i32) -> (i32, i32) {
    %c0_i32 = arith.constant 0 : i32
    %c0_i32_0 = arith.constant 0 : i32
    return %arg0, %c0_i32 : i32, i32
  }
  func.func @transform_4(%arg0: i32) -> (i32, i32) {
    %c0_i32 = arith.constant 0 : i32
    %c0_i32_0 = arith.constant 0 : i32
    return %arg0, %c0_i32 : i32, i32
  }
  func.func @transform_5(%arg0: i32) -> (i32, i32) {
    %c0_i32 = arith.constant 0 : i32
    %c0_i32_0 = arith.constant 0 : i32
    return %arg0, %c0_i32 : i32, i32
  }
  func.func @transform_6(%arg0: i32) -> (i32, i32, i32) {
    %c0_i32 = arith.constant 0 : i32
    %c0_i32_0 = arith.constant 0 : i32
    %c0_i32_1 = arith.constant 0 : i32
    return %arg0, %c0_i32, %c0_i32_0 : i32, i32, i32
  }
}

</mosaic_0001>

<bundles_post_ra>
// kernel: tpu_custom_call.1
= control target key start
LH: loop header
LB: loop body
LE: loop exit
PB: predicated region body
PF: predicated region fallthrough
CT: control target
= control target key end

     0   :  { %vm31_vm0 = vcmask 130048   ;;  %vm68_vm1 = vcmask 64512   ;;  %v185_v4 = vmov 0   ;;  %s265_s0 = inlined_call_operand.vmem [shape: f32[8,16], index: 0, kind: input, shape index: {}]   ;;  %s266_s1 = inlined_call_operand.vmem [shape: s32[8,1], index: 1, kind: input, shape index: {}]   ;;  %s267_s2 = inlined_call_operand.vmem [shape: f32[8,8], index: 2, kind: input, shape index: {}]   ;;  %s268_s3 = inlined_call_operand.vmem [shape: s32[8,1], index: 3, kind: input, shape index: {}]   ;;  %s269_s4 = inlined_call_operand.vmem [shape: f32[8,4], index: 4, kind: input, shape index: {}]   ;;  %s270_s5 = inlined_call_operand.vmem [shape: f32[8,4], index: 5, kind: input, shape index: {}]   ;;  %s271_s6 = inlined_call_operand.hbm [shape: f32[1,8,128], index: 6, kind: output, shape index: {}]  }
   0x1   :  { %v30_v0 = vld [vmem:[%s265_s0] sm:$0xff]  ;;  %151 = vset.pattern.permute.xlu1 %v185_v4  ;;  %152 = vset.pattern.permute.xlu0 %v185_v4 }
   0x2   :  { %v67_v1 = vld [vmem:[%s267_s2] sm:$0xff]  ;;  %v32_v3 = vsel %vm31_vm0, %v30_v0, -inf }
   0x3   :  { %v41_v2 = vld [vmem:[%s266_s1] sm:$0xff] }
   0x4   :  { %11 = vsyncpa [#allocation3], 0  ;;  %33 = vmax.xlane.f32.xlu0 %v32_v3  ;;  %45 = vperm.xlu1 %151, %v41_v2   ;;  %v69_v5 = vsel %vm68_vm1, %v67_v1, -inf  ;;  %v78_v6 = vld [vmem:[%s268_s3] sm:$0xff]  ;;  %v42_v12 = vlaneseq  ;;  %vm56_vm4 = vcmask 7168   ;;  %vm108_vm5 = vcmask 31744  }
   0x5   :  { %v101_v29 = vld [vmem:[%s269_s4] sm:$0xff]  ;;  %s186_s30 = smov [#allocation2]  }
   0x6   :  { %v236_v15 = vand.u32 127, %v42_v12  ;;  %v102_v30 = vld [vmem:[%s270_s5] sm:$0xff]  ;;  %s135_s7 = sshll.u32 %s186_s30, 4  ;;  %s136_s7 = int_to_ptr.vmem [resolvable:$true] %s135_s7 }
   0x7   :  { %v103_v33 = vsub.f32 %v101_v29, %v102_v30  ;;  %s161_s8 = scalar_lea.vmem %s136_s7, 128  ;;  %p166_p1 = scmp.lt.s32.totalorder %s136_s7, %s136_s7 }
   0x8   :  { %70 = vmax.xlane.f32.xlu0 %v69_v5  ;;  %80 = vperm.xlu1 %151, %v78_v6   ;;  %vm121_vm6 = vcmp.eq.s32.totalorder %v236_v15, 2  ;;  %vm120_vm7 = vcmp.eq.s32.totalorder %v236_v15, 1  ;;  %vm119_vm8 = vcmp.eq.s32.totalorder %v236_v15, 0  ;;  %p162_p0 = scmp.ne.s32.totalorder %s136_s7, %s161_s8  ;;  %p167_p2 = scmp.lt.s32.totalorder %s161_s8, %s161_s8 }
   0x9   :  { %v107_v39 = vmul.f32 %v103_v33, %v103_v33 }
   0xa   :  { %p168_p3 = por %p167_p2, %p166_p1 }
   0xb   :  { %v109_v41 = vsel %vm108_vm5, %v107_v39, 0.0 }
   0xc   :  { %p169_p4 = pnand %p168_p3, %p162_p0 }
  0x83   :  { %v46_v14 = vpop.permute.xlu1 %45 }
  0x84   :  { %vm47_vm2 = vcmp.eq.s32.totalorder %v236_v15, %v46_v14 }
  0x87   :  { %v81_v17 = vpop.permute.xlu1 %80 }
  0x88   :  { %vm82_vm3 = vcmp.eq.s32.totalorder %v236_v15, %v81_v17 }
  0x91   :  { %v34_v7 = vpop.xlane.xlu0 %33 }
  0x92   :  { %v35_v8 = vsub.f32 %v30_v0, %v34_v7 }
  0x94   :  { %v36_v9 = vmul.f32 1.442695, %v35_v8  ;;  %v48_v19 = vsel %vm47_vm2, %v35_v8, 0.0 }
  0x95   :  { %v71_v10 = vpop.xlane.xlu0 %70  ;;  %v49_v21 = vsel %vm31_vm0, %v48_v19, 0.0 }
  0x96   :  { %153 = vpow2.f32 %v36_v9  ;;  %v72_v11 = vsub.f32 %v67_v1, %v71_v10 }
  0x98   :  { %v73_v13 = vmul.f32 1.442695, %v72_v11  ;;  %v83_v23 = vsel %vm82_vm3, %v72_v11, 0.0 }
  0x99   :  { %v84_v24 = vsel %vm68_vm1, %v83_v23, 0.0 }
  0x9a   :  { %155 = vpow2.f32 %v73_v13 }
  0xa0   :  { %v154_v16 = vpop.eup %153 }
  0xa1   :  { %v38_v18 = vsel %vm31_vm0, %v154_v16, 0.0 }
  0xa2   :  { %39 = vadd.xlane.f32.xlu0 %v38_v18 }
  0xa4   :  { %v156_v20 = vpop.eup %155 }
  0xa5   :  { %v75_v22 = vsel %vm68_vm1, %v156_v20, 0.0 }
  0xa6   :  { %50 = vadd.xlane.f32.xlu0 %v49_v21  ;;  %76 = vadd.xlane.f32.xlu1 %v75_v22 }
  0xaa   :  { %85 = vadd.xlane.f32.xlu0 %v84_v24 }
 0x12f   :  { %v40_v25 = vpop.xlane.xlu0 %39 }
 0x130   :  { %157 = vlog2.f32 %v40_v25 }
 0x133   :  { %v77_v26 = vpop.xlane.xlu1 %76  ;;  %v51_v28 = vpop.xlane.xlu0 %50 }
 0x134   :  { %159 = vlog2.f32 %v77_v26 }
 0x137   :  { %v86_v37 = vpop.xlane.xlu0 %85 }
 0x13a   :  { %v158_v27 = vpop.eup %157 }
 0x13b   :  { %v53_v31 = vmul.f32 0.6931472, %v158_v27 }
 0x13d   :  { %v54_v32 = vsub.f32 %v53_v31, %v51_v28 }
 0x13e   :  { %v160_v34 = vpop.eup %159 }
 0x13f   :  { %v88_v35 = vmul.f32 0.6931472, %v160_v34  ;;  %v57_v36 = vsel %vm56_vm4, %v54_v32, 0.0 }
 0x140   :  { %58 = vadd.xlane.f32.xlu0 %v57_v36 }
 0x141   :  { %v89_v38 = vsub.f32 %v88_v35, %v86_v37 }
 0x143   :  { %v91_v40 = vsel %vm56_vm4, %v89_v38, 0.0 }
 0x144   :  { %92 = vadd.xlane.f32.xlu0 %v91_v40 }
 0x148   :  { %110 = vadd.xlane.f32.xlu0 %v109_v41 }
 0x1cd   :  { %v59_v42 = vpop.xlane.xlu0 %58 }
 0x1ce   :  { %v60_v43 = vrot.slane %v59_v42, 4 }
 0x1d0   :  { %v61_v44 = vadd.f32 %v60_v43, %v59_v42 }
 0x1d1   :  { %v93_v45 = vpop.xlane.xlu0 %92 }
 0x1d2   :  { %v62_v46 = vrot.slane %v61_v44, 2  ;;  %v94_v47 = vrot.slane %v93_v45, 4 }
 0x1d4   :  { %v95_v48 = vadd.f32 %v94_v47, %v93_v45  ;;  %v63_v49 = vadd.f32 %v62_v46, %v61_v44 }
 0x1d5   :  { %v111_v50 = vpop.xlane.xlu0 %110 }
 0x1d6   :  { %v96_v51 = vrot.slane %v95_v48, 2  ;;  %v112_v52 = vrot.slane %v111_v50, 4  ;;  %v64_v53 = vrot.slane %v63_v49, 1 }
 0x1d8   :  { %v113_v54 = vadd.f32 %v112_v52, %v111_v50  ;;  %v65_v55 = vadd.f32 %v64_v53, %v63_v49  ;;  %v97_v56 = vadd.f32 %v96_v51, %v95_v48 }
 0x1da   :  { %v114_v57 = vrot.slane %v113_v54, 2  ;;  %143 = vpush %v65_v55  ;;  %v98_v58 = vrot.slane %v97_v56, 1 }
 0x1dc   :  { %v115_v59 = vadd.f32 %v114_v57, %v113_v54  ;;  %v99_v60 = vadd.f32 %v98_v58, %v97_v56 }
 0x1de   :  { %145 = vpush %v99_v60  ;;  %v116_v61 = vrot.slane %v115_v59, 1 }
 0x1e0   :  { %v117_v62 = vadd.f32 %v116_v61, %v115_v59 }
 0x1e2   :  { %147 = vpush %v117_v62 }
 0x20b   :  { %s144_s4 = spop %143 }
 0x20c   :  { %v126_v2 = vstv %s144_s4 }
 0x20f   :  { %s146_s5 = spop %145 }
 0x210   :  { %v124_v0 = vstv %s146_s5 }
 0x213   :  { %s148_s29 = spop %147 }
 0x214   :  { %v122_v63 = vstv %s148_s29 }
 0x215   :  { %v123_v1 = vsel %vm121_vm6, %v122_v63, 0.0 }
 0x216   :  { %v125_v3 = vsel %vm120_vm7, %v124_v0, %v123_v1 }
 0x217   :  { %v127_v4 = vsel %vm119_vm8, %v126_v2, %v125_v3 }
 0x218   :  { %128 = vst [vmem:[#allocation2] sm:$0xff] %v127_v4 }
 0x219   :  { %172 = shalt.err (!%p169_p4)
}
 0x21a   :  { %s173_s11 = scalar_lea.hbm %s271_s6, 128 }
 0x21b   :  { %p174_p5 = scmp.ne.s32.totalorder %s271_s6, %s173_s11  ;;  %p177_p6 = scmp.lt.u32.totalorder %s173_s11, %s271_s6 }
 0x21d   :  { %p179_p7 = pnand %p177_p6, %p174_p5 }
 0x21f   :  { %182 = shalt.err (!%p179_p7)
}
 0x220   :  { %138 = dma.vmem_to_hbm [thread:$0]  %s136_s7, 128, %s271_s6, [#allocation3]  }
 0x221   :  { %183 = dma.done.wait [#allocation3], 128  }
 0x222   :  { %184 = vsyncadd [#allocation3], 4294967168 }
 0x223   :  { %142 = vsyncpa [#allocation3], 1 }

</bundles_post_ra>
